<compile_context>
chip_gen: v6e
topology: v6e:2x2x1
jax: 0.10.0
libtpu: 0.0.40
codegen_flags: <defaults>
</compile_context>

<pallas_src>
import functools

import jax
import jax.numpy as jnp
from jax.experimental import pallas as pl
from jax.experimental.pallas import tpu as pltpu


# --------------------------------------------------------------------- helpers
def _round_up(x: int, m: int) -> int:
    return ((x + m - 1) // m) * m


def _cdiv(a: int, b: int) -> int:
    return -(-a // b)


def _pad2d(a, rows: int, cols: int):
    r, c = a.shape
    if r == rows and c == cols:
        return a
    return jnp.pad(a, ((0, rows - r), (0, cols - c)))


@functools.lru_cache(maxsize=None)
def _vmem_capacity_bytes() -> int:
    """Physical VMEM per core; conservative (v7x-sized) fallback if query fails."""
    try:
        return int(pltpu.get_tpu_info().vmem_capacity_bytes)
    except Exception:
        return 64 * 1024 * 1024


def _vmem_limit_bytes() -> int:
    cap = _vmem_capacity_bytes()
    # ~3/4 of physical VMEM: ~96 MiB on v5e/v6e (128 MiB), ~48 MiB on v7x (64 MiB).
    return int(min(max(cap * 3 // 4, 32 * 1024 * 1024), 96 * 1024 * 1024))


def _matmul_tile_caps():
    """Generation-aware tile caps for the layer-wise tiled matmul path."""
    cap = _vmem_capacity_bytes()
    if cap >= 100 * 1024 * 1024:      # v5e / v6e: 128 MiB VMEM
        return 512, 1024, 1024        # tm, tn, tk caps
    return 512, 512, 512              # v7x: 64 MiB VMEM -- re-derived, not reused


def _pick_tile(dim: int, cap: int, align: int) -> int:
    """Tile <= cap, multiple of `align`, chosen to minimize padding of `dim`."""
    cap = max(align, (cap // align) * align)
    if dim <= cap:
        return _round_up(dim, align)
    n = _cdiv(dim, cap)
    return _round_up(_cdiv(dim, n), align)


@functools.lru_cache(maxsize=None)
def _single_buffer_supported() -> bool:
    """Probe whether pipeline_mode=pl.Buffered(1) works for constant-index inputs."""
    try:
        def _probe(x_ref, w_ref, o_ref):
            o_ref[...] = jnp.dot(x_ref[...], w_ref[...],
                                 preferred_element_type=jnp.float32)

        x = (jnp.arange(16 * 128, dtype=jnp.float32) % 7.0).reshape(16, 128)
        w = jnp.eye(128, dtype=jnp.float32)
        out = pl.pallas_call(
            _probe,
            out_shape=jax.ShapeDtypeStruct((16, 128), jnp.float32),
            grid=(2,),
            in_specs=[
                pl.BlockSpec((8, 128), lambda i: (i, 0)),
                pl.BlockSpec((128, 128), lambda i: (0, 0),
                             pipeline_mode=pl.Buffered(1)),
            ],
            out_specs=pl.BlockSpec((8, 128), lambda i: (i, 0)),
        )(x, w)
        out = jax.block_until_ready(out)
        return bool(jnp.allclose(out, x, atol=1e-2))
    except Exception:
        return False


# ----------------------------------------------------------- params / prepare
def init_mlp_params(key, input_dim, hidden_dim, output_dim, num_layers=2,
                    dtype=jnp.float32):
    """Init mirroring torch.nn.Linear layer shapes; W stored as [in, out]."""
    dims = [input_dim] + [hidden_dim] * (num_layers - 1) + [output_dim]
    params = []
    for i in range(num_layers):
        fan_in, fan_out = dims[i], dims[i + 1]
        key, kw, kb = jax.random.split(key, 3)
        bound = float(fan_in) ** -0.5
        w = jax.random.uniform(kw, (fan_in, fan_out), dtype, -bound, bound)
        b = jax.random.uniform(kb, (fan_out,), dtype, -bound, bound)
        params.append((w, b))
    return params


def prepare_mlp_params(params, compute_dtype=jnp.bfloat16):
    """One-time weight prep (cast + per-layer lane-dense padding), hoisted off
    the forward critical path. Padded rows/cols are zero, so padded lanes stay
    zero through ReLU and subsequent layers."""
    cd = compute_dtype
    dims = [params[0][0].shape[0]] + [w.shape[1] for w, _ in params]
    pdims = [_round_up(d, 128) for d in dims]
    weights, biases = [], []
    for l, (w, b) in enumerate(params):
        weights.append(_pad2d(w.astype(cd), pdims[l], pdims[l + 1]))
        biases.append(_pad2d(b.reshape(1, -1).astype(jnp.float32), 1, pdims[l + 1]))
    return {
        "weights": tuple(weights),
        "biases": tuple(biases),
        "dims": tuple(dims),
        "pdims": tuple(pdims),
        "compute_dtype": cd,
        "single_buffer_ok": _single_buffer_supported(),
    }


# -------------------------------------------------------- fused whole-MLP path
def _mlp_fused_kernel(*refs, num_layers):
    """All layers in one kernel; activation never leaves VMEM/vregs."""
    x_ref, o_ref = refs[0], refs[-1]
    cd = x_ref.dtype
    h = x_ref[...]
    for l in range(num_layers):                       # static unroll, L is small
        w_ref = refs[1 + 2 * l]
        b_ref = refs[2 + 2 * l]
        y = jnp.dot(h, w_ref[...], preferred_element_type=jnp.float32) + b_ref[...]
        if l < num_layers - 1:
            h = jnp.maximum(y, 0.0).astype(cd)
        else:
            o_ref[...] = y.astype(o_ref.dtype)


def _fused_plan(prepared, M, out_dtype):
    """Return tiling plan for the fused path, or None if it doesn't fit VMEM."""
    cd = prepared["compute_dtype"]
    pdims = prepared["pdims"]
    dmax = max(pdims)
    vmem_limit = _vmem_limit_bytes()
    buf = 1 if prepared.get("single_buffer_ok", False) else 2
    cd_size = jnp.dtype(cd).itemsize
    out_size = jnp.dtype(out_dtype).itemsize

    w_bytes = buf * sum(int(w.size) * w.dtype.itemsize for w in prepared["weights"])
    b_bytes = buf * sum(int(b.size) * b.dtype.itemsize for b in prepared["biases"])

    # Per batch-row VMEM: double-buffered x/out tiles + f32 matmul result
    # + f32 bias-added slab + bf16 recast of h (conservative estimate).
    per_row = (2 * pdims[0] * cd_size + 2 * pdims[-1] * out_size
               + dmax * (4 + 4 + cd_size))
    headroom = 2 * 1024 * 1024
    avail = vmem_limit - w_bytes - b_bytes - headroom
    align_m = 8 if M <= 8 else 16                     # 16: bf16 sublane packing
    if avail < per_row * align_m:
        return None                                   # fall back to layer-wise

    tm_cap = 256 if dmax >= 512 else 512
    tm_fit = (avail // per_row) // align_m * align_m
    tm_eff = int(max(align_m, min(tm_cap, tm_fit)))
    min_tiles = 2 if M >= 32 else 1                   # keep both v7x TCs busy
    n_tiles = max(min_tiles, _cdiv(M, tm_eff))
    tm = _round_up(_cdiv(M, n_tiles), align_m)        # minimize batch padding
    return {"tm": int(tm), "n_tiles": int(n_tiles),
            "vmem_limit": int(vmem_limit),
            "single_buffer": buf == 1}


def mlp_fused_pallas(prepared, x, plan):
    """Whole-MLP forward in a single pallas_call (weights VMEM-resident)."""
    M, _ = x.shape
    cd = prepared["compute_dtype"]
    dims, pdims = prepared["dims"], prepared["pdims"]
    L = len(prepared["weights"])
    tm, n_tiles = plan["tm"], plan["n_tiles"]
    Mp = tm * n_tiles

    xp = _pad2d(x.astype(cd), Mp, pdims[0])

    const_kwargs = {}
    if plan["single_buffer"]:
        # Constant index map across the grid -> nothing to double buffer.
        const_kwargs = dict(pipeline_mode=pl.Buffered(1))

    in_specs = [pl.BlockSpec((tm, pdims[0]), lambda i: (i, 0))]
    operands = [xp]
    for l in range(L):
        w = prepared["weights"][l]
        b = prepared["biases"][l]
        in_specs.append(pl.BlockSpec(tuple(w.shape), lambda i: (0, 0), **const_kwargs))
        in_specs.append(pl.BlockSpec(tuple(b.shape), lambda i: (0, 0), **const_kwargs))
        operands += [w, b]

    flops = 2 * sum(M * dims[i] * dims[i + 1] for i in range(L))
    bytes_accessed = int(
        xp.size * xp.dtype.itemsize
        + sum(int(w.size) * w.dtype.itemsize for w in prepared["weights"])
        + sum(int(b.size) * b.dtype.itemsize for b in prepared["biases"])
        + Mp * pdims[-1] * jnp.dtype(x.dtype).itemsize)

    out = pl.pallas_call(
        functools.partial(_mlp_fused_kernel, num_layers=L),
        out_shape=jax.ShapeDtypeStruct((Mp, pdims[-1]), x.dtype),
        grid=(n_tiles,),
        in_specs=in_specs,
        out_specs=pl.BlockSpec((tm, pdims[-1]), lambda i: (i, 0)),
        compiler_params=pltpu.CompilerParams(
            dimension_semantics=("parallel",),
            vmem_limit_bytes=plan["vmem_limit"]),
        cost_estimate=pl.CostEstimate(flops=flops, transcendentals=0,
                                      bytes_accessed=bytes_accessed),
    )(*operands)
    return out[:M, :dims[-1]]


# ------------------------------------------------- tiled per-layer linear path
def _linear_tiled_kernel(x_ref, w_ref, b_ref, o_ref, acc_ref, *, apply_relu):
    k = pl.program_id(2)

    @pl.when(k == 0)
    def _():
        acc_ref[...] = jnp.zeros_like(acc_ref)

    acc_ref[...] += jnp.dot(x_ref[...], w_ref[...],
                            preferred_element_type=jnp.float32)

    @pl.when(k == pl.num_programs(2) - 1)
    def _():
        y = acc_ref[...] + b_ref[...]                  # bias add in f32
        if apply_relu:
            y = jnp.maximum(y, 0.0)
        o_ref[...] = y.astype(o_ref.dtype)


def linear_pallas(x, w, b, *, apply_relu, out_dtype=None):
    """y = relu?(x @ w + b); x:[M,Kx], w:[K,N] (compute dtype, K >= Kx), b:(N,)/(1,N)."""
    M, Kx = x.shape
    K, N = w.shape
    assert Kx <= K
    out_dtype = out_dtype or x.dtype
    cd = w.dtype

    tm_cap, tn_cap, tk_cap = _matmul_tile_caps()
    tm = _pick_tile(M, tm_cap, 8 if M <= 8 else 16)
    tk = _pick_tile(K, tk_cap, 128)
    tn = _pick_tile(N, tn_cap, 128)
    Mp, Kp, Np = _round_up(M, tm), _round_up(K, tk), _round_up(N, tn)

    xp = _pad2d(x.astype(cd), Mp, Kp)
    wp = _pad2d(w, Kp, Np)
    bp = _pad2d(b.reshape(1, -1).astype(jnp.float32), 1, Np)

    flops = 2 * M * Kx * N
    bytes_accessed = int(xp.size * xp.dtype.itemsize
                         + wp.size * wp.dtype.itemsize
                         + bp.size * 4
                         + Mp * Np * jnp.dtype(out_dtype).itemsize)

    out = pl.pallas_call(
        functools.partial(_linear_tiled_kernel, apply_relu=apply_relu),
        out_shape=jax.ShapeDtypeStruct((Mp, Np), out_dtype),
        grid=(Mp // tm, Np // tn, Kp // tk),           # reduction (K) axis last
        in_specs=[
            pl.BlockSpec((tm, tk), lambda i, j, k: (i, k)),
            pl.BlockSpec((tk, tn), lambda i, j, k: (k, j)),
            pl.BlockSpec((1, tn), lambda i, j, k: (0, j)),
        ],
        out_specs=pl.BlockSpec((tm, tn), lambda i, j, k: (i, j)),
        scratch_shapes=[pltpu.VMEM((tm, tn), jnp.float32)],
        compiler_params=pltpu.CompilerParams(
            dimension_semantics=("parallel", "parallel", "arbitrary"),
            vmem_limit_bytes=_vmem_limit_bytes()),
        cost_estimate=pl.CostEstimate(flops=flops, transcendentals=0,
                                      bytes_accessed=bytes_accessed),
    )(xp, wp, bp)
    return out[:M, :N]


# ------------------------------------------------------- module-level forward
def mlp_forward(params_or_prepared, x, *, compute_dtype=jnp.bfloat16,
                force_layerwise=False):
    """Forward: Linear+ReLU for all but last layer, plain Linear last."""
    if isinstance(params_or_prepared, dict):
        prepared = params_or_prepared
    else:
        prepared = prepare_mlp_params(params_or_prepared, compute_dtype)

    out_dim = prepared["dims"][-1]
    plan = None if force_layerwise else _fused_plan(prepared, x.shape[0], x.dtype)
    if plan is not None:
        return mlp_fused_pallas(prepared, x, plan)

    # Layer-wise tiled path for large MLPs (intermediates stay bf16, lane-dense).
    L = len(prepared["weights"])
    h = x
    for l in range(L):
        last = l == L - 1
        h = linear_pallas(h, prepared["weights"][l], prepared["biases"][l],
                          apply_relu=not last,
                          out_dtype=(x.dtype if last else prepared["compute_dtype"]))
    return h[:, :out_dim]


def mlp_reference(params, x, compute_dtype=None):
    """Pure-JAX reference mirroring the kernel's mixed-precision semantics."""
    n = len(params)
    h = x.astype(jnp.float32)
    for i, (w, b) in enumerate(params):
        if compute_dtype is not None:
            hc = h.astype(compute_dtype).astype(jnp.float32)
            wc = w.astype(compute_dtype).astype(jnp.float32)
        else:
            hc, wc = h, w.astype(jnp.float32)
        h = hc @ wc + b.astype(jnp.float32)
        if i < n - 1:
            h = jnp.maximum(h, 0.0)
    return h.astype(x.dtype)


# ----------------------------------------------------------------------- test
if __name__ == "__main__":
    # Small MLP matching the module defaults (exercises the fused path).
    input_dim, hidden_dim, output_dim, num_layers = 16, 32, 8, 3
    batch = 8

    key = jax.random.PRNGKey(0)
    key, kx = jax.random.split(key)
    x = jax.random.normal(kx, (batch, input_dim), jnp.float32)
    params = init_mlp_params(key, input_dim, hidden_dim, output_dim, num_layers)

    prepared = prepare_mlp_params(params)                # one-time weight prep
    fused_fwd = jax.jit(lambda xx: mlp_forward(prepared, xx))
    out = jax.block_until_ready(fused_fwd(x))
    ref = mlp_reference(params, x, compute_dtype=jnp.bfloat16)
    assert out.shape == (batch, output_dim)
    assert jnp.allclose(out, ref, atol=2e-2, rtol=2e-2), (
        f"fused mismatch: max abs diff = {float(jnp.max(jnp.abs(out - ref)))}")

    # Larger MLP to exercise the tiled per-layer path (M,N,K grid + f32 acc).
    key, kx2 = jax.random.split(key)
    big_in, big_hid, big_out, big_layers, big_batch = 256, 384, 256, 2, 64
    x2 = jax.random.normal(kx2, (big_batch, big_in), jnp.float32)
    params2 = init_mlp_params(key, big_in, big_hid, big_out, big_layers)
    prepared2 = prepare_mlp_params(params2)

    out2 = jax.block_until_ready(mlp_forward(prepared2, x2, force_layerwise=True))
    ref2 = mlp_reference(params2, x2, compute_dtype=jnp.bfloat16)
    assert out2.shape == (big_batch, big_out)
    assert jnp.allclose(out2, ref2, atol=2e-2, rtol=2e-2), (
        f"tiled mismatch: max abs diff = {float(jnp.max(jnp.abs(out2 - ref2)))}")

    print("KERNEL_OK")
</pallas_src>

<mosaic_0001>
module attributes {stable_mosaic.version = 11 : i64} {
  func.func @_probe(%arg0: i32, %arg1: memref<8x128xf32, #tpu.memory_space<vmem>>, %arg2: memref<128x128xf32, #tpu.memory_space<vmem>>, %arg3: memref<8x128xf32, #tpu.memory_space<vmem>>) attributes {dimension_semantics = [#tpu.dimension_semantics<arbitrary>], iteration_bounds = array<i64: 2>, scalar_prefetch = 0 : i64, scratch_operands = 0 : i64, tpu.core_type = #tpu.core_type<tc>, window_params = [{transform_indices = @transform_0, window_bounds = array<i64: 8, 128>}, {pipeline_mode = #tpu.pipeline_mode<synchronous>, transform_indices = @transform_1, window_bounds = array<i64: 128, 128>}, {transform_indices = @transform_2, window_bounds = array<i64: 8, 128>}]} {
    %c0 = arith.constant 0 : index
    %c0_0 = arith.constant 0 : index
    %0 = vector.load %arg1[%c0, %c0_0] : memref<8x128xf32, #tpu.memory_space<vmem>>, vector<8x128xf32>
    %c0_1 = arith.constant 0 : index
    %c0_2 = arith.constant 0 : index
    %1 = vector.load %arg2[%c0_1, %c0_2] : memref<128x128xf32, #tpu.memory_space<vmem>>, vector<128x128xf32>
    %cst = arith.constant dense<0.000000e+00> : vector<8x128xf32>
    %2 = tpu.matmul %0, %1, %cst {dimension_numbers = #tpu.dot_dimension_numbers<[1], [0], [0], [1], [0, 0, 1, 1], [], []>} : vector<8x128xf32>, vector<128x128xf32>, vector<8x128xf32> -> vector<8x128xf32>
    %c0_3 = arith.constant 0 : index
    %c0_4 = arith.constant 0 : index
    %3 = vector.load %arg3[%c0_3, %c0_4] : memref<8x128xf32, #tpu.memory_space<vmem>>, vector<8x128xf32>
    tpu.vector_store %arg3[%c0_3, %c0_4], %2 {strides = array<i32>} : memref<8x128xf32, #tpu.memory_space<vmem>>, vector<8x128xf32>,
    return
  }
  func.func @transform_0(%arg0: i32) -> (i32, i32) {
    %c0_i32 = arith.constant 0 : i32
    %c0_i32_0 = arith.constant 0 : i32
    return %arg0, %c0_i32 : i32, i32
  }
  func.func @transform_1(%arg0: i32) -> (i32, i32) {
    %c0_i32 = arith.constant 0 : i32
    %c0_i32_0 = arith.constant 0 : i32
    %c0_i32_1 = arith.constant 0 : i32
    return %c0_i32, %c0_i32_0 : i32, i32
  }
  func.func @transform_2(%arg0: i32) -> (i32, i32) {
    %c0_i32 = arith.constant 0 : i32
    %c0_i32_0 = arith.constant 0 : i32
    return %arg0, %c0_i32 : i32, i32
  }
}

module attributes {stable_mosaic.version = 11 : i64} {
  func.func @_mlp_fused_kernel(%arg0: i32, %arg1: memref<8x128xbf16, #tpu.memory_space<vmem>>, %arg2: memref<128x128xbf16, #tpu.memory_space<vmem>>, %arg3: memref<1x128xf32, #tpu.memory_space<vmem>>, %arg4: memref<128x128xbf16, #tpu.memory_space<vmem>>, %arg5: memref<1x128xf32, #tpu.memory_space<vmem>>, %arg6: memref<128x128xbf16, #tpu.memory_space<vmem>>, %arg7: memref<1x128xf32, #tpu.memory_space<vmem>>, %arg8: memref<8x128xf32, #tpu.memory_space<vmem>>) attributes {dimension_semantics = [#tpu.dimension_semantics<parallel>], iteration_bounds = array<i64: 1>, scalar_prefetch = 0 : i64, scratch_operands = 0 : i64, tpu.core_type = #tpu.core_type<tc>, window_params = [{transform_indices = @transform_0, window_bounds = array<i64: 8, 128>}, {pipeline_mode = #tpu.pipeline_mode<synchronous>, transform_indices = @transform_1, window_bounds = array<i64: 128, 128>}, {pipeline_mode = #tpu.pipeline_mode<synchronous>, transform_indices = @transform_2, window_bounds = array<i64: 1, 128>}, {pipeline_mode = #tpu.pipeline_mode<synchronous>, transform_indices = @transform_3, window_bounds = array<i64: 128, 128>}, {pipeline_mode = #tpu.pipeline_mode<synchronous>, transform_indices = @transform_4, window_bounds = array<i64: 1, 128>}, {pipeline_mode = #tpu.pipeline_mode<synchronous>, transform_indices = @transform_5, window_bounds = array<i64: 128, 128>}, {pipeline_mode = #tpu.pipeline_mode<synchronous>, transform_indices = @transform_6, window_bounds = array<i64: 1, 128>}, {transform_indices = @transform_7, window_bounds = array<i64: 8, 128>}]} {
    %c0 = arith.constant 0 : index
    %c0_0 = arith.constant 0 : index
    %0 = vector.load %arg1[%c0, %c0_0] : memref<8x128xbf16, #tpu.memory_space<vmem>>, vector<8x128xbf16>
    %c0_1 = arith.constant 0 : index
    %c0_2 = arith.constant 0 : index
    %1 = vector.load %arg2[%c0_1, %c0_2] : memref<128x128xbf16, #tpu.memory_space<vmem>>, vector<128x128xbf16>
    %cst = arith.constant dense<0.000000e+00> : vector<8x128xf32>
    %2 = tpu.matmul %0, %1, %cst {dimension_numbers = #tpu.dot_dimension_numbers<[1], [0], [0], [1], [0, 0, 1, 1], [], []>} : vector<8x128xbf16>, vector<128x128xbf16>, vector<8x128xf32> -> vector<8x128xf32>
    %c0_3 = arith.constant 0 : index
    %c0_4 = arith.constant 0 : index
    %3 = vector.load %arg3[%c0_3, %c0_4] : memref<1x128xf32, #tpu.memory_space<vmem>>, vector<1x128xf32>
    %4 = vector.broadcast %3 : vector<1x128xf32> to vector<8x128xf32>
    %5 = arith.addf %2, %4 : vector<8x128xf32>
    %cst_5 = arith.constant 0.000000e+00 : f32
    %6 = vector.broadcast %cst_5 : f32 to vector<8x128xf32>
    %7 = arith.maximumf %5, %6 : vector<8x128xf32>
    %8 = arith.truncf %7 : vector<8x128xf32> to vector<8x128xbf16>
    %c0_6 = arith.constant 0 : index
    %c0_7 = arith.constant 0 : index
    %9 = vector.load %arg4[%c0_6, %c0_7] : memref<128x128xbf16, #tpu.memory_space<vmem>>, vector<128x128xbf16>
    %cst_8 = arith.constant dense<0.000000e+00> : vector<8x128xf32>
    %10 = tpu.matmul %8, %9, %cst_8 {dimension_numbers = #tpu.dot_dimension_numbers<[1], [0], [0], [1], [0, 0, 1, 1], [], []>} : vector<8x128xbf16>, vector<128x128xbf16>, vector<8x128xf32> -> vector<8x128xf32>
    %c0_9 = arith.constant 0 : index
    %c0_10 = arith.constant 0 : index
    %11 = vector.load %arg5[%c0_9, %c0_10] : memref<1x128xf32, #tpu.memory_space<vmem>>, vector<1x128xf32>
    %12 = vector.broadcast %11 : vector<1x128xf32> to vector<8x128xf32>
    %13 = arith.addf %10, %12 : vector<8x128xf32>
    %cst_11 = arith.constant 0.000000e+00 : f32
    %14 = vector.broadcast %cst_11 : f32 to vector<8x128xf32>
    %15 = arith.maximumf %13, %14 : vector<8x128xf32>
    %16 = arith.truncf %15 : vector<8x128xf32> to vector<8x128xbf16>
    %c0_12 = arith.constant 0 : index
    %c0_13 = arith.constant 0 : index
    %17 = vector.load %arg6[%c0_12, %c0_13] : memref<128x128xbf16, #tpu.memory_space<vmem>>, vector<128x128xbf16>
    %cst_14 = arith.constant dense<0.000000e+00> : vector<8x128xf32>
    %18 = tpu.matmul %16, %17, %cst_14 {dimension_numbers = #tpu.dot_dimension_numbers<[1], [0], [0], [1], [0, 0, 1, 1], [], []>} : vector<8x128xbf16>, vector<128x128xbf16>, vector<8x128xf32> -> vector<8x128xf32>
    %c0_15 = arith.constant 0 : index
    %c0_16 = arith.constant 0 : index
    %19 = vector.load %arg7[%c0_15, %c0_16] : memref<1x128xf32, #tpu.memory_space<vmem>>, vector<1x128xf32>
    %20 = vector.broadcast %19 : vector<1x128xf32> to vector<8x128xf32>
    %21 = arith.addf %18, %20 : vector<8x128xf32>
    %c0_17 = arith.constant 0 : index
    %c0_18 = arith.constant 0 : index
    %22 = vector.load %arg8[%c0_17, %c0_18] : memref<8x128xf32, #tpu.memory_space<vmem>>, vector<8x128xf32>
    tpu.vector_store %arg8[%c0_17, %c0_18], %21 {strides = array<i32>} : memref<8x128xf32, #tpu.memory_space<vmem>>, vector<8x128xf32>,
    return
  }
  func.func @transform_0(%arg0: i32) -> (i32, i32) {
    %c0_i32 = arith.constant 0 : i32
    %c0_i32_0 = arith.constant 0 : i32
    return %arg0, %c0_i32 : i32, i32
  }
  func.func @transform_1(%arg0: i32) -> (i32, i32) {
    %c0_i32 = arith.constant 0 : i32
    %c0_i32_0 = arith.constant 0 : i32
    %c0_i32_1 = arith.constant 0 : i32
    return %c0_i32, %c0_i32_0 : i32, i32
  }
  func.func @transform_2(%arg0: i32) -> (i32, i32) {
    %c0_i32 = arith.constant 0 : i32
    %c0_i32_0 = arith.constant 0 : i32
    %c0_i32_1 = arith.constant 0 : i32
    return %c0_i32, %c0_i32_0 : i32, i32
  }
  func.func @transform_3(%arg0: i32) -> (i32, i32) {
    %c0_i32 = arith.constant 0 : i32
    %c0_i32_0 = arith.constant 0 : i32
    %c0_i32_1 = arith.constant 0 : i32
    return %c0_i32, %c0_i32_0 : i32, i32
  }
  func.func @transform_4(%arg0: i32) -> (i32, i32) {
    %c0_i32 = arith.constant 0 : i32
    %c0_i32_0 = arith.constant 0 : i32
    %c0_i32_1 = arith.constant 0 : i32
    return %c0_i32, %c0_i32_0 : i32, i32
  }
  func.func @transform_5(%arg0: i32) -> (i32, i32) {
    %c0_i32 = arith.constant 0 : i32
    %c0_i32_0 = arith.constant 0 : i32
    %c0_i32_1 = arith.constant 0 : i32
    return %c0_i32, %c0_i32_0 : i32, i32
  }
  func.func @transform_6(%arg0: i32) -> (i32, i32) {
    %c0_i32 = arith.constant 0 : i32
    %c0_i32_0 = arith.constant 0 : i32
    %c0_i32_1 = arith.constant 0 : i32
    return %c0_i32, %c0_i32_0 : i32, i32
  }
  func.func @transform_7(%arg0: i32) -> (i32, i32) {
    %c0_i32 = arith.constant 0 : i32
    %c0_i32_0 = arith.constant 0 : i32
    return %arg0, %c0_i32 : i32, i32
  }
}

</mosaic_0001>

<bundles_post_ra>
// kernel: tpu_custom_call.1
= control target key start
LH: loop header
LB: loop body
LE: loop exit
PB: predicated region body
PF: predicated region fallthrough
CT: control target
= control target key end

     0   :  { %7 = vsyncpa [#allocation3], 0  ;;  %s802_s0 = inlined_call_operand.hbm [shape: f32[16,128], index: 0, kind: input, shape index: {}]   ;;  %s803_s1 = inlined_call_operand.hbm [shape: f32[128,128], index: 1, kind: input, shape index: {}]   ;;  %s804_s2 = inlined_call_operand.hbm [shape: f32[16,128], index: 2, kind: output, shape index: {}]  }
   0x1   :  { %9 = vsyncpa [#allocation3 + $0x1], 0 }
   0x2   :  { %10 = vsyncpa [#allocation6], 0 }
   0x3   :  { %11 = vsyncpa [#allocation4], 0 }
   0x4   :  { %13 = vsyncpa [#allocation4 + $0x1], 0  ;;  %s629_s9 = smov 0   ;;  %s631_s10 = smov 0  }
   0x5   :  { %s633_s11 = smov 0   ;;  %s635_s12 = smov 0  }
   0x6 LB: > { %s650_s13 = sadd.s32 4294967295, %s605_s12   ;;  %s356_s14 = sadd.s32 4294967294, %s605_s12   ;;  %s605_s12 = sphi %s635_s12, %s826_s12   ;;  %s601_s11 = sphi %s633_s11, %s825_s11   ;;  %s597_s10 = sphi %s631_s10, %s824_s10   ;;  %s593_s9 = sphi %s629_s9, %s823_s9  }
   0x7   : > { %p39_p0 = scmp.ne.s32.totalorder %s597_s10, %s593_s9  ;;  %p805_p1 = scmp.eq.s32.totalorder %s650_s13, 0 }
   0x8   : > { %p90_p3 = scmp.eq.s32.totalorder %s356_s14, 1  ;;  %p357_p5 = scmp.ge.s32.totalorder %s605_s12, 1 }
   0x9   : > { %p659_p4 = por %p805_p1, %p39_p0  ;;  %p97_p7 = scmp.lt.s32.totalorder %s605_s12, 3 }
   0xa   : > { %p664_p6 = por %p90_p3, %p39_p0  ;;  %s607_s18 = smov [#allocation5]  }
   0xb   : > { %s809_s15 = scalar_select %p659_p4, 1, 0 }
   0xc   : > { %s810_s16 = scalar_select %p664_p6, 1, 0 }
   0xd   : > { %p669_p8 = pnand %p357_p5, %p97_p7  ;;  %s109_s19 = sshll.u32 %s607_s18, 4  ;;  %s110_s19 = int_to_ptr.vmem [resolvable:$true] %s109_s19 }
   0xe   : > { %s683_s21 = sadd.s32 1, %s605_s12   ;;  %s26_s22 = sadd.s32 1, %s601_s11 }
   0xf   : > { %s811_s17 = scalar_select %p669_p8, 1, 0 }
  0x10   : > { %p430_p9 = pneg %p669_p8  ;;  %s23_s23 = ssub.s32 %s605_s12, %s683_s21 }
  0x11   : > { %s494_s24 = scalar_lea.vmem %s110_s19, 2048  ;;  %p502_p5 = scmp.lt.s32.totalorder %s110_s19, %s110_s19 }
  0x12   : > { %p678_p11 = pnand %p430_p9, %p805_p1  ;;  %p495_p13 = scmp.ne.s32.totalorder %s110_s19, %s494_s24 }
  0x13   : > { %p503_p7 = scmp.lt.s32.totalorder %s494_s24, %s494_s24 }
  0x14   : > { %p485_p12 = pneg %p678_p11 }
  0x15   : > { %p504_p10 = por %p503_p7, %p502_p5 }
  0x16   : > { %p497_p0 = pnand %p495_p13, %p485_p12 }
  0x18   : > { %p498_p3 = pneg %p497_p0 }
  0x1a   : > { %p505_p2 = pnand %p504_p10, %p498_p3 }
  0x1c   : > { %508 = shalt.err (!%p505_p2)
}
  0x1d   : > { %s608_s25 = smov 128   ;;  %s609_s26 = smov 8  }
  0x1e   : > { %433 = dma.hbm_to_vmem [thread:$0]  (!%p678_p11), %s803_s1, 2048, %s110_s19, [#allocation6], %s608_s25, %s608_s25, %s609_s26  }
  0x1f   : > { %p24_p9 = scmp.eq.s32.totalorder %s23_s23, 0  ;;  %p33_p12 = scmp.ne.s32.totalorder %s601_s11, %s597_s10 }
  0x20   : > { %p34_p10 = scmp.eq.s32.totalorder %s605_s12, 0  ;;  %p443_p2 = scmp.lt.s32.totalorder %s605_s12, 2 }
  0x21   : > { %s700_s29 = scalar_select %p24_p9, %s601_s11, %s26_s22  }
  0x22   : > { %p35_p13 = por %p34_p10, %p33_p12  ;;  %p813_p0 = scmp.eq.s32.totalorder %s650_s13, 1 }
  0x23   : > { %s123_s3 = sand.u32 1, %s601_s11   ;;  %s361_s4 = sshll.u32 %s605_s12, 7 }
  0x24   : > { %p704_p3 = por %p813_p0, %p33_p12  ;;  %s360_s5 = sshll.u32 %s123_s3, 3 }
  0x25   : > { %s713_s8 = scalar_lea.hbm %s802_s0, %s361_s4  ;;  %s127_s14 = scalar_lea.vmem [#allocation2], %s360_s5 }
  0x26   : > { %s814_s30 = scalar_select %p704_p3, 1, 0 }
  0x27   : > { %s134_s18 = sshll.u32 %s127_s14, 4  ;;  %p715_p11 = pnand %p443_p2, %p35_p13  ;;  %s135_s18 = int_to_ptr.vmem [resolvable:$true] %s134_s18 }
  0x28   : > { %s124_s20 = scalar_lea.sflag [#allocation3], %s123_s3  ;;  %s509_s22 = scalar_lea.hbm %s713_s8, 128 }
  0x29   : > { %p510_p5 = scmp.ne.s32.totalorder %s713_s8, %s509_s22  ;;  %p511_p7 = pneg %p715_p11 }
  0x2a   : > { %s514_s25 = scalar_lea.hbm %s802_s0, 256  ;;  %p515_p10 = scmp.lt.s32.totalorder %s713_s8, %s802_s0 }
  0x2b   : > { %p512_p9 = pnand %p511_p7, %p510_p5  ;;  %p516_p2 = scmp.lt.s32.totalorder %s514_s25, %s509_s22 }
  0x2d   : > { %p513_p12 = pneg %p512_p9  ;;  %p517_p13 = por %p516_p2, %p515_p10 }
  0x2f   : > { %p518_p0 = pnand %p517_p13, %p513_p12 }
  0x31   : > { %521 = shalt.err (!%p518_p0)
}
  0x32   : > { %s522_s28 = scalar_lea.vmem %s135_s18, 128  ;;  %s610_s3 = smov [#allocation2]  }
  0x33   : > { %p523_p1 = scmp.ne.s32.totalorder %s135_s18, %s522_s28  ;;  %s527_s4 = sshll.u32 %s610_s3, 4  ;;  %s528_s4 = int_to_ptr.vmem [resolvable:$false] %s527_s4 }
  0x34   : > { %s529_s5 = scalar_lea.vmem %s528_s4, 256  ;;  %p530_p5 = scmp.lt.s32.totalorder %s135_s18, %s528_s4 }
  0x35   : > { %p525_p6 = pnand %p523_p1, %p511_p7  ;;  %p531_p9 = scmp.lt.s32.totalorder %s529_s5, %s522_s28 }
  0x37   : > { %p526_p3 = pneg %p525_p6  ;;  %p532_p4 = por %p531_p9, %p530_p5 }
  0x39   : > { %p533_p8 = pnand %p532_p4, %p526_p3 }
  0x3b   : > { %536 = shalt.err (!%p533_p8)
}
  0x3c   : > { %437 = dma.hbm_to_vmem [thread:$0]  (!%p715_p11), %s713_s8, 128, %s135_s18, %s124_s20  }
  0x3d   : > { %p816_p12 = scmp.ne.s32.totalorder %s811_s17, 0 }
  0x3e   : > { %s736_s6 = sand.u32 (!%p816_p12), 1, %s597_s10   ;;  %p817_p1 = scmp.ne.s32.totalorder (!%p816_p12), %s809_s15, 0 }
  0x3f   : > { %143 = sbr.rel (%p816_p12) target bundleno = 312 (0x138), region = 28  ;;  %s363_s7 = sshll.u32 (!%p816_p12), %s736_s6, 3 }
  0x40   : > { %s146_s14 = scalar_lea.sflag (!%p816_p12), [#allocation3], %s736_s6  ;;  %s742_s22 = scalar_lea.vmem (!%p816_p12), [#allocation2], %s363_s7 }
  0x44   : > { %580 = dma.done.wait (%p817_p1), %s146_s14, 128  }
  0x45   : > { %582 = vsyncadd (%p817_p1), %s146_s14, 4294967168  ;;  %p818_p4 = scmp.eq.s32.totalorder %s650_s13, 0 }
  0x47   : > { %584 = dma.done.wait (%p818_p4), [#allocation6], 2048   ;;  %p819_p6 = pmov %p818_p4 }
  0x48   : > { %v611_v0 = vmov 0.0   ;;  %vm612_vm0 = vmmov 0   ;;  %v190_v1 = vld [vmem:[#allocation5 + $0x78] sm:$0xff]  ;;  %v189_v2 = vld [vmem:[#allocation5 + $0x70] sm:$0xff]  ;;  %v188_v3 = vld [vmem:[#allocation5 + $0x68] sm:$0xff]  ;;  %s173_s15 = scalar_lea.vmem [#allocation7], %s363_s7 }
  0x49   : > { %586 = vsyncadd (%p819_p6), [#allocation6], 4294965248  ;;  %387 = vmatprep.subr.mxu0 %v611_v0  ;;  %419 = vmatprep.mubr.msk.f32.mxu0 %vm612_vm0, %v611_v0  ;;  %v187_v4 = vld [vmem:[#allocation5 + $0x60] sm:$0xff]  ;;  %v186_v5 = vld [vmem:[#allocation5 + $0x58] sm:$0xff]  ;;  %s276_s17 = sshll.u32 %s173_s15, 4  ;;  %s367_s8 = sshll.u32 %s650_s13, 7  ;;  %s756_s17 = int_to_ptr.vmem [resolvable:$true] %s276_s17 }
  0x4a   : > { %388 = vmatpush3.msra.mxu0 %v190_v1  ;;  %v185_v6 = vld [vmem:[#allocation5 + $0x50] sm:$0xff]  ;;  %v184_v7 = vld [vmem:[#allocation5 + $0x48] sm:$0xff]  ;;  %v183_v8 = vld [vmem:[#allocation5 + $0x40] sm:$0xff]  ;;  %s761_s20 = scalar_lea.hbm %s804_s2, %s367_s8  ;;  %s263_s23 = scalar_lea.sflag [#allocation4], %s736_s6 }
  0x4b   : > { %389 = vmatprep.subr.mxu0 %v611_v0  ;;  %v182_v9 = vld [vmem:[#allocation5 + $0x38] sm:$0xff]  ;;  %v181_v10 = vld [vmem:[#allocation5 + $0x30] sm:$0xff]  ;;  %v180_v11 = vld [vmem:[#allocation5 + $0x28] sm:$0xff]  ;;  %s537_s24 = scalar_lea.vmem %s756_s17, 128  ;;  %p820_p3 = scmp.ne.s32.totalorder %s814_s30, 0 }
  0x4c   : > { %390 = vmatpush3.msra.mxu0 %v189_v2  ;;  %v179_v12 = vld [vmem:[#allocation5 + $0x20] sm:$0xff]  ;;  %v178_v13 = vld [vmem:[#allocation5 + $0x18] sm:$0xff]  ;;  %v177_v14 = vld [vmem:[#allocation5 + $0x10] sm:$0xff]  ;;  %p538_p8 = scmp.ne.s32.totalorder %s756_s17, %s537_s24  ;;  %s613_s13 = smov [#allocation7]  }
  0x4d   : > { %391 = vmatprep.subr.mxu0 %v611_v0  ;;  %v176_v15 = vld [vmem:[#allocation5 + $0x8] sm:$0xff]  ;;  %v175_v16 = vld [vmem:[#allocation5] sm:$0xff]  ;;  %v174_v17 = vld [vmem:[%s742_s22] sm:$0xff]  ;;  %s541_s25 = sshll.u32 %s613_s13, 4  ;;  %s542_s25 = int_to_ptr.vmem [resolvable:$false] %s541_s25 }
  0x4e   : > { %392 = vmatpush3.msra.mxu0 %v188_v3  ;;  %p539_p11 = pnand %p538_p8, %p820_p3  ;;  %s543_s26 = scalar_lea.vmem %s542_s25, 256 }
  0x4f   : > { %393 = vmatprep.subr.mxu0 %v611_v0  ;;  %p544_p10 = scmp.lt.s32.totalorder %s756_s17, %s542_s25  ;;  %p545_p2 = scmp.lt.s32.totalorder %s543_s26, %s537_s24 }
  0x50   : > { %394 = vmatpush3.msra.mxu0 %v187_v4  ;;  %p540_p7 = pneg %p539_p11 }
  0x51   : > { %395 = vmatprep.subr.mxu0 %v611_v0  ;;  %p546_p13 = por %p545_p2, %p544_p10 }
  0x52   : > { %396 = vmatpush3.msra.mxu0 %v186_v5 }
  0x53   : > { %397 = vmatprep.subr.mxu0 %v611_v0  ;;  %p547_p0 = pnand %p546_p13, %p540_p7 }
  0x54   : > { %398 = vmatpush3.msra.mxu0 %v185_v6 }
  0x55   : > { %399 = vmatprep.subr.mxu0 %v611_v0 }
  0x56   : > { %400 = vmatpush3.msra.mxu0 %v184_v7 }
  0x57   : > { %401 = vmatprep.subr.mxu0 %v611_v0 }
  0x58   : > { %402 = vmatpush3.msra.mxu0 %v183_v8 }
  0x59   : > { %403 = vmatprep.subr.mxu0 %v611_v0 }
  0x5a   : > { %404 = vmatpush3.msra.mxu0 %v182_v9 }
  0x5b   : > { %405 = vmatprep.subr.mxu0 %v611_v0 }
  0x5c   : > { %406 = vmatpush3.msra.mxu0 %v181_v10 }
  0x5d   : > { %407 = vmatprep.subr.mxu0 %v611_v0 }
  0x5e   : > { %408 = vmatpush3.msra.mxu0 %v180_v11 }
  0x5f   : > { %409 = vmatprep.subr.mxu0 %v611_v0 }
  0x60   : > { %410 = vmatpush3.msra.mxu0 %v179_v12 }
  0x61   : > { %411 = vmatprep.subr.mxu0 %v611_v0 }
  0x62   : > { %412 = vmatpush3.msra.mxu0 %v178_v13 }
  0x63   : > { %413 = vmatprep.subr.mxu0 %v611_v0 }
  0x64   : > { %414 = vmatpush3.msra.mxu0 %v177_v14 }
  0x65   : > { %415 = vmatprep.subr.mxu0 %v611_v0 }
  0x66   : > { %416 = vmatpush3.msra.mxu0 %v176_v15 }
  0x67   : > { %417 = vmatprep.subr.mxu0 %v611_v0 }
  0x68   : > { %418 = vmatpush3.msra.mxu0 %v175_v16 }
  0x69   : > { %420 = vmatmul.mubr.f32.vlgmr.msra.gmra.mxu0 %v174_v17 }
 0x129   : > { %v257_v18 = vpop.f32.mrf.mxu0 }
 0x12a   : > { %261 = vst [vmem:[%s173_s15] sm:$0xff] %v257_v18 }
 0x12b   : > { %v421_v19 = vpop.f32.mrf.mxu0 }
 0x12c   : > { %550 = shalt.err (!%p547_p0)
}
 0x12d   : > { %s551_s27 = scalar_lea.hbm %s761_s20, 128  ;;  %s555_s4 = scalar_lea.hbm %s804_s2, 256 }
 0x12e   : > { %p552_p5 = scmp.ne.s32.totalorder %s761_s20, %s551_s27  ;;  %p556_p1 = scmp.lt.s32.totalorder %s761_s20, %s804_s2 }
 0x12f   : > { %p557_p4 = scmp.lt.s32.totalorder %s555_s4, %s551_s27 }
 0x130   : > { %p553_p9 = pnand %p552_p5, %p820_p3 }
 0x131   : > { %p558_p6 = por %p557_p4, %p556_p1 }
 0x132   : > { %p554_p12 = pneg %p553_p9 }
 0x134   : > { %p559_p8 = pnand %p558_p6, %p554_p12 }
 0x136   : > { %562 = shalt.err (!%p559_p8)
}
 0x137   : > { %428 = dma.vmem_to_hbm [thread:$0]  (%p820_p3), %s756_s17, 128, %s761_s20, %s263_s23  }
 0x138 PF: > { %s288_s7 = sand.u32 1, %s593_s9   ;;  %p821_p11 = scmp.ne.s32.totalorder %s810_s16, 0 }
 0x139   : > { %p822_p7 = scmp.ge.s32.totalorder %s605_s12, 2  ;;  %s289_s14 = scalar_lea.sflag [#allocation4], %s288_s7 }
 0x13b   : > { %p439_p10 = pnand %p822_p7, %p821_p11 }
 0x13d   : > { %p440_p2 = pneg %p439_p10 }
 0x13f   : > { %588 = dma.done.wait (%p440_p2), %s289_s14, 128  }
 0x140   : > { %590 = vsyncadd (%p440_p2), %s289_s14, 4294967168  ;;  %p16_p13 = scmp.ge.s32.totalorder %s683_s21, 4   ;;  %s823_s9 = smov %s597_s10 }
 0x141   : > { %s824_s10 = smov %s601_s11  ;;  %s825_s11 = smov %s700_s29 }
 0x142   : > { %s826_s12 = smov %s683_s21  ;;  %18 = sbr.rel (!%p16_p13) target bundleno = 6 (0x6), region = 77 }
 0x147   :  { %294 = vsyncpa [#allocation3], 1 }
 0x148   :  { %296 = vsyncpa [#allocation3 + $0x1], 1 }
 0x149   :  { %297 = vsyncpa [#allocation6], 1 }
 0x14a   :  { %298 = vsyncpa [#allocation4], 1 }
 0x14b   :  { %300 = vsyncpa [#allocation4 + $0x1], 1 }

// kernel: _lambda_.1
= control target key start
LH: loop header
LB: loop body
LE: loop exit
PB: predicated region body
PF: predicated region fallthrough
CT: control target
= control target key end

     0   :  { %12 = vsyncpa [#allocation3], 0  ;;  %s758_s0 = inlined_call_operand.vmem [shape: bf16[8,128], index: 0, kind: input, shape index: {}]   ;;  %s759_s1 = inlined_call_operand.hbm [shape: bf16[128,128], index: 1, kind: input, shape index: {}]   ;;  %s760_s2 = inlined_call_operand.vmem [shape: f32[1,128], index: 2, kind: input, shape index: {}]   ;;  %s761_s3 = inlined_call_operand.hbm [shape: bf16[128,128], index: 3, kind: input, shape index: {}]   ;;  %s762_s4 = inlined_call_operand.vmem [shape: f32[1,128], index: 4, kind: input, shape index: {}]   ;;  %s763_s5 = inlined_call_operand.hbm [shape: bf16[128,128], index: 5, kind: input, shape index: {}]   ;;  %s764_s6 = inlined_call_operand.vmem [shape: f32[1,128], index: 6, kind: input, shape index: {}]   ;;  %s765_s7 = inlined_call_operand.hbm [shape: f32[8,128], index: 7, kind: output, shape index: {}]  }
   0x1   :  { %13 = vsyncpa [#allocation6], 0 }
   0x2   :  { %14 = vsyncpa [#allocation4], 0  ;;  %s656_s24 = smov [#allocation5]   ;;  %s657_s26 = smov [#allocation2]  }
   0x3   :  { %s36_s25 = sshll.u32 %s656_s24, 4  ;;  %s22_s27 = sshll.u32 %s657_s26, 4  ;;  %s37_s25 = int_to_ptr.vmem [resolvable:$true] %s36_s25  ;;  %s23_s27 = int_to_ptr.vmem [resolvable:$true] %s22_s27 }
   0x4   :  { %s578_s28 = scalar_lea.vmem %s37_s25, 1024  ;;  %p583_p1 = scmp.lt.s32.totalorder %s37_s25, %s37_s25 }
   0x5   :  { %p579_p0 = scmp.ne.s32.totalorder %s37_s25, %s578_s28  ;;  %p584_p2 = scmp.lt.s32.totalorder %s578_s28, %s578_s28 }
   0x7   :  { %p585_p3 = por %p584_p2, %p583_p1 }
   0x9   :  { %p586_p4 = pnand %p585_p3, %p579_p0 }
   0xb   :  { %589 = shalt.err (!%p586_p4)
}
   0xc   :  { %s658_s29 = smov 64   ;;  %s659_s30 = smov 4  }
   0xd   :  { %42 = dma.hbm_to_vmem [thread:$0]  %s761_s3, 1024, %s37_s25, [#allocation6], %s658_s29, %s658_s29, %s659_s30  }
   0xe   :  { %s598_s10 = scalar_lea.vmem %s23_s27, 1024  ;;  %p603_p6 = scmp.lt.s32.totalorder %s23_s27, %s23_s27 }
   0xf   :  { %p599_p5 = scmp.ne.s32.totalorder %s23_s27, %s598_s10  ;;  %p604_p7 = scmp.lt.s32.totalorder %s598_s10, %s598_s10 }
  0x11   :  { %p605_p8 = por %p604_p7, %p603_p6 }
  0x13   :  { %p606_p9 = pnand %p605_p8, %p599_p5 }
  0x15   :  { %609 = shalt.err (!%p606_p9)
}
  0x16   :  { %28 = dma.hbm_to_vmem [thread:$0]  %s759_s1, 1024, %s23_s27, [#allocation3], %s658_s29, %s658_s29, %s659_s30  }
  0x17   :  { %s660_s13 = smov [#allocation7]  }
  0x18   :  { %s50_s14 = sshll.u32 %s660_s13, 4  ;;  %s51_s14 = int_to_ptr.vmem [resolvable:$true] %s50_s14 }
  0x19   :  { %s618_s15 = scalar_lea.vmem %s51_s14, 1024  ;;  %p623_p11 = scmp.lt.s32.totalorder %s51_s14, %s51_s14 }
  0x1a   :  { %p619_p10 = scmp.ne.s32.totalorder %s51_s14, %s618_s15  ;;  %p624_p12 = scmp.lt.s32.totalorder %s618_s15, %s618_s15 }
  0x1c   :  { %p625_p13 = por %p624_p12, %p623_p11 }
  0x1e   :  { %p626_p0 = pnand %p625_p13, %p619_p10 }
  0x20   :  { %629 = shalt.err (!%p626_p0)
}
  0x21   :  { %56 = dma.hbm_to_vmem [thread:$0]  %s763_s5, 1024, %s51_s14, [#allocation6], %s658_s29, %s658_s29, %s659_s30  }
  0x22   :  { %650 = dma.done.wait [#allocation3], 1024  }
  0x23   :  { %651 = vsyncadd [#allocation3], 4294966272 }
  0x24   :  { %652 = dma.done.wait [#allocation6], 2048  }
  0x25   :  { %653 = vsyncadd [#allocation6], 4294965248  ;;  %v661_v0 = vmov 0.0   ;;  %vm662_vm0 = vmmov 0   ;;  %v546_v1 = vld [vmem:[#allocation2 + $0x38] sm:$0xff]   ;;  %v547_v2 = vld [vmem:[#allocation2 + $0x30] sm:$0xff]  }
  0x26   :  { %478 = vmatprep.subr.bf16.mxu0 %v661_v0  ;;  %494 = vmatprep.mubr.msk.bf16.mxu0 %vm662_vm0, %v661_v0  ;;  %v548_v3 = vld [vmem:[#allocation2 + $0x28] sm:$0xff]   ;;  %v554_v4 = vld [vmem:[#allocation5 + $0x38] sm:$0xff]   ;;  %v549_v5 = vld [vmem:[#allocation2 + $0x20] sm:$0xff]   ;;  %s663_s21 = smov [#allocation8]  }
  0x27   :  { %498 = vmatprep.subr.bf16.mxu1 %v661_v0  ;;  %514 = vmatprep.mubr.msk.bf16.mxu1 %vm662_vm0, %v661_v0  ;;  %v555_v6 = vld [vmem:[#allocation5 + $0x30] sm:$0xff]   ;;  %v550_v7 = vld [vmem:[#allocation2 + $0x18] sm:$0xff]   ;;  %v556_v8 = vld [vmem:[#allocation5 + $0x28] sm:$0xff]   ;;  %s414_s22 = sshll.u32 %s663_s21, 4  ;;  %s415_s22 = int_to_ptr.vmem [resolvable:$true] %s414_s22 }
  0x28   :  { %479 = vmatpush3.bf16.msra.mxu0 %v546_v1  ;;  %499 = vmatpush3.bf16.msra.mxu1 %v554_v4  ;;  %v551_v9 = vld [vmem:[#allocation2 + $0x10] sm:$0xff]   ;;  %v557_v10 = vld [vmem:[#allocation5 + $0x20] sm:$0xff]   ;;  %v552_v11 = vld [vmem:[#allocation2 + $0x8] sm:$0xff]   ;;  %p635_p2 = scmp.lt.s32.totalorder %s415_s22, %s415_s22 }
  0x29   :  { %480 = vmatprep.subr.bf16.mxu0 %v661_v0  ;;  %500 = vmatprep.subr.bf16.mxu1 %v661_v0  ;;  %v558_v12 = vld [vmem:[#allocation5 + $0x18] sm:$0xff]   ;;  %v553_v13 = vld [vmem:[#allocation2] sm:$0xff]   ;;  %v559_v14 = vld [vmem:[#allocation5 + $0x10] sm:$0xff]  }
  0x2a   :  { %v69_v15 = vld [vmem:[%s758_s0] sm:$0xf]  ;;  %v560_v16 = vld [vmem:[#allocation5 + $0x8] sm:$0xff]   ;;  %v562_v18 = vld [vmem:[#allocation7 + $0x38] sm:$0xff]  }
  0x2b   :  { %v561_v17 = vld [vmem:[#allocation5] sm:$0xff]   ;;  %v563_v19 = vld [vmem:[#allocation7 + $0x30] sm:$0xff]   ;;  %v564_v20 = vld [vmem:[#allocation7 + $0x28] sm:$0xff]  }
  0x2c   :  { %481 = vmatpush3.bf16.msra.mxu0 %v547_v2  ;;  %501 = vmatpush3.bf16.msra.mxu1 %v555_v6  ;;  %v565_v21 = vld [vmem:[#allocation7 + $0x20] sm:$0xff]   ;;  %v566_v22 = vld [vmem:[#allocation7 + $0x18] sm:$0xff]   ;;  %v567_v23 = vld [vmem:[#allocation7 + $0x10] sm:$0xff]  }
  0x2d   :  { %482 = vmatprep.subr.bf16.mxu0 %v661_v0  ;;  %502 = vmatprep.subr.bf16.mxu1 %v661_v0  ;;  %v424_v24 = vld [vmem:[%s760_s2] ss:$0 sm:$0xff]  ;;  %v568_v32 = vld [vmem:[#allocation7 + $0x8] sm:$0xff]  }
  0x2e   :  { %v569_v33 = vld [vmem:[#allocation7] sm:$0xff]  }
  0x2f   :  { %v433_v34 = vld [vmem:[%s762_s4] ss:$0 sm:$0xff]  ;;  %s630_s4 = scalar_lea.vmem %s415_s22, 128 }
  0x30   :  { %483 = vmatpush3.bf16.msra.mxu0 %v548_v3  ;;  %503 = vmatpush3.bf16.msra.mxu1 %v556_v8  ;;  %v442_v42 = vld [vmem:[%s764_s6] ss:$0 sm:$0xff]  ;;  %p631_p1 = scmp.ne.s32.totalorder %s415_s22, %s630_s4  ;;  %p636_p3 = scmp.lt.s32.totalorder %s630_s4, %s630_s4 }
  0x31   :  { %484 = vmatprep.subr.bf16.mxu0 %v661_v0  ;;  %504 = vmatprep.subr.bf16.mxu1 %v661_v0 }
  0x32   :  { %p637_p4 = por %p636_p3, %p635_p2 }
  0x34   :  { %485 = vmatpush3.bf16.msra.mxu0 %v549_v5  ;;  %505 = vmatpush3.bf16.msra.mxu1 %v557_v10  ;;  %p638_p5 = pnand %p637_p4, %p631_p1 }
  0x35   :  { %486 = vmatprep.subr.bf16.mxu0 %v661_v0  ;;  %506 = vmatprep.subr.bf16.mxu1 %v661_v0 }
  0x38   :  { %487 = vmatpush3.bf16.msra.mxu0 %v550_v7  ;;  %507 = vmatpush3.bf16.msra.mxu1 %v558_v12 }
  0x39   :  { %488 = vmatprep.subr.bf16.mxu0 %v661_v0  ;;  %508 = vmatprep.subr.bf16.mxu1 %v661_v0 }
  0x3c   :  { %489 = vmatpush3.bf16.msra.mxu0 %v551_v9  ;;  %509 = vmatpush3.bf16.msra.mxu1 %v559_v14 }
  0x3d   :  { %490 = vmatprep.subr.bf16.mxu0 %v661_v0  ;;  %510 = vmatprep.subr.bf16.mxu1 %v661_v0 }
  0x40   :  { %491 = vmatpush3.bf16.msra.mxu0 %v552_v11  ;;  %511 = vmatpush3.bf16.msra.mxu1 %v560_v16 }
  0x41   :  { %492 = vmatprep.subr.bf16.mxu0 %v661_v0  ;;  %512 = vmatprep.subr.bf16.mxu1 %v661_v0 }
  0x44   :  { %493 = vmatpush3.bf16.msra.mxu0 %v553_v13  ;;  %513 = vmatpush3.bf16.msra.mxu1 %v561_v17 }
  0x45   :  { %518 = vmatprep.subr.bf16.mxu0 %v661_v0 }
  0x47   :  { %495 = vmatmul.mubr.bf16.vlgmr.msra.gmra.mxu0 %v69_v15 }
  0x48   :  { %534 = vmatprep.mubr.msk.bf16.mxu0 %vm662_vm0, %v661_v0  ;;  %519 = vmatpush3.bf16.msra.mxu0 %v562_v18 }
  0x49   :  { %520 = vmatprep.subr.bf16.mxu0 %v661_v0 }
  0x4c   :  { %521 = vmatpush3.bf16.msra.mxu0 %v563_v19 }
  0x4d   :  { %522 = vmatprep.subr.bf16.mxu0 %v661_v0 }
  0x50   :  { %523 = vmatpush3.bf16.msra.mxu0 %v564_v20 }
  0x51   :  { %524 = vmatprep.subr.bf16.mxu0 %v661_v0 }
  0x54   :  { %525 = vmatpush3.bf16.msra.mxu0 %v565_v21 }
  0x55   :  { %526 = vmatprep.subr.bf16.mxu0 %v661_v0 }
  0x58   :  { %527 = vmatpush3.bf16.msra.mxu0 %v566_v22 }
  0x59   :  { %528 = vmatprep.subr.bf16.mxu0 %v661_v0 }
  0x5c   :  { %529 = vmatpush3.bf16.msra.mxu0 %v567_v23 }
  0x5d   :  { %530 = vmatprep.subr.bf16.mxu0 %v661_v0 }
  0x60   :  { %531 = vmatpush3.bf16.msra.mxu0 %v568_v32 }
  0x61   :  { %532 = vmatprep.subr.bf16.mxu0 %v661_v0 }
  0x64   :  { %533 = vmatpush3.bf16.msra.mxu0 %v569_v33 }
 0x107   :  { %v175_v25 = vpop.f32.mrf.mxu0 }
 0x108   :  { %v176_v26 = vadd.f32 %v424_v24, %v175_v25 }
 0x109   :  { %v496_v27 = vpop.f32.mrf.mxu0 }
 0x10a   :  { %v181_v28 = vmax.f32 %v176_v26, 0.0 }
 0x10b   :  { %v178_v29 = vpop.f32.mrf.mxu0 }
 0x10c   :  { %v182_v30 = vpack.c.bf16 %v181_v28, %v181_v28 }
 0x10d   :  { %v497_v31 = vpop.f32.mrf.mxu0 }
 0x10e   :  { %515 = vmatmul.mubr.bf16.vlgmr.msra.gmra.mxu1 %v182_v30 }
 0x1ce   :  { %v288_v35 = vpop.f32.mrf.mxu1 }
 0x1cf   :  { %v289_v36 = vadd.f32 %v433_v34, %v288_v35 }
 0x1d0   :  { %v516_v37 = vpop.f32.mrf.mxu1 }
 0x1d1   :  { %v294_v38 = vmax.f32 %v289_v36, 0.0 }
 0x1d2   :  { %v291_v39 = vpop.f32.mrf.mxu1 }
 0x1d3   :  { %v295_v40 = vpack.c.bf16 %v294_v38, %v294_v38 }
 0x1d4   :  { %v517_v41 = vpop.f32.mrf.mxu1 }
 0x1d5   :  { %535 = vmatmul.mubr.bf16.vlgmr.msra.gmra.mxu0 %v295_v40 }
 0x295   :  { %v401_v43 = vpop.f32.mrf.mxu0 }
 0x296   :  { %v402_v44 = vadd.f32 %v442_v42, %v401_v43 }
 0x297   :  { %v536_v45 = vpop.f32.mrf.mxu0 }
 0x298   :  { %407 = vst [vmem:[#allocation8] sm:$0xff] %v402_v44 }
 0x299   :  { %v404_v46 = vpop.f32.mrf.mxu0 }
 0x29a   :  { %641 = shalt.err (!%p638_p5)
}
 0x29b   :  { %417 = dma.vmem_to_hbm [thread:$0]  %s415_s22, 128, %s765_s7, [#allocation4]   ;;  %v537_v47 = vpop.f32.mrf.mxu0 }
 0x29c   :  { %654 = dma.done.wait [#allocation4], 128  }
 0x29d   :  { %655 = vsyncadd [#allocation4], 4294967168 }
 0x29e   :  { %421 = vsyncpa [#allocation3], 1 }
 0x29f   :  { %422 = vsyncpa [#allocation6], 1 }
 0x2a0   :  { %423 = vsyncpa [#allocation4], 1 }

</bundles_post_ra>
